<compile_context>
chip_gen: v7x
topology: tpu7x:2x2x1
jax: 0.10.0
libtpu: 0.0.40
codegen_flags: <defaults>
</compile_context>

<pallas_src>
import functools

import jax
import jax.numpy as jnp
from jax.experimental import pallas as pl
from jax.experimental.pallas import tpu as pltpu

LANE = 128
LOGICAL_DIMS = (100, 50, 25, 2)   # fc1/fc2/fc3/fc4 output widths


def _round_up(n, m):
    return ((n + m - 1) // m) * m


# ---------------------------------------------------------------------------
# Kernel: one TB-row batch tile through all four layers.
# x tile is f32 (cast to bf16 in-kernel); weights bf16; biases f32; f32 accumulation.
# ---------------------------------------------------------------------------
def _mlp_kernel(x_ref, w1_ref, b1_ref, w2_ref, b2_ref, w3_ref, b3_ref,
                w4_ref, b4_ref, o_ref):
    # fc1 + ReLU
    h = jnp.dot(x_ref[...].astype(jnp.bfloat16), w1_ref[...],
                preferred_element_type=jnp.float32)
    h = jnp.maximum(h + b1_ref[...], 0.0)
    # fc2 + ReLU
    h = jnp.dot(h.astype(jnp.bfloat16), w2_ref[...],
                preferred_element_type=jnp.float32)
    h = jnp.maximum(h + b2_ref[...], 0.0)
    # fc3 + tanh
    h = jnp.dot(h.astype(jnp.bfloat16), w3_ref[...],
                preferred_element_type=jnp.float32)
    h = jnp.tanh(h + b3_ref[...])
    # fc4 (no activation); store only the real output columns.
    h = jnp.dot(h.astype(jnp.bfloat16), w4_ref[...],
                preferred_element_type=jnp.float32)
    h = h + b4_ref[...]
    o_ref[...] = h[:, : o_ref.shape[1]].astype(o_ref.dtype)


# ---------------------------------------------------------------------------
# Parameter handling
# ---------------------------------------------------------------------------
def init_params(key, input_size):
    """Logical (unpadded) f32 params, PyTorch nn.Linear default init:
    U(-1/sqrt(fan_in), +1/sqrt(fan_in)).  Weights stored (in, out)."""
    dims = [input_size] + list(LOGICAL_DIMS)
    params = {}
    for idx in range(1, len(dims)):
        fan_in, fan_out = dims[idx - 1], dims[idx]
        key, kw, kb = jax.random.split(key, 3)
        bound = 1.0 / jnp.sqrt(jnp.float32(fan_in))
        params[f"w{idx}"] = jax.random.uniform(
            kw, (fan_in, fan_out), jnp.float32, -bound, bound)
        params[f"b{idx}"] = jax.random.uniform(
            kb, (1, fan_out), jnp.float32, -bound, bound)
    return params


def prepare_padded_params(params, input_size):
    """Pad feature dims to 128 lanes (weights -> bf16, biases f32), EXCEPT the
    layer-1 input dim, which stays at the raw input_size so the kernel reads
    the un-padded x directly from HBM."""
    dims = [input_size] + list(LOGICAL_DIMS)
    padded = {}
    for idx in range(1, len(dims)):
        fin, fout = dims[idx - 1], dims[idx]
        fin_p = input_size if idx == 1 else _round_up(fin, LANE)
        fout_p = _round_up(fout, LANE)
        w = jnp.zeros((fin_p, fout_p), jnp.bfloat16)
        w = w.at[:fin, :fout].set(params[f"w{idx}"].astype(jnp.bfloat16))
        b = jnp.zeros((1, fout_p), jnp.float32)
        b = b.at[:, :fout].set(params[f"b{idx}"])
        padded[f"w{idx}"] = w
        padded[f"b{idx}"] = b
    return padded


# ---------------------------------------------------------------------------
# Wrapper
# ---------------------------------------------------------------------------
@functools.partial(jax.jit, static_argnames=("tb",))
def neural_net_forward(x, padded, *, tb=2048):
    """x: (B, input_size) f32.  padded: output of prepare_padded_params."""
    B, d_in = x.shape
    assert padded["w1"].shape[0] == d_in
    d_out = LOGICAL_DIMS[-1]

    # Batch tile: multiple of 8 sublanes, capped so the grid has >=2 parallel
    # steps whenever B allows it (feeds both v7x TensorCores).
    tb = _round_up(max(tb, 8), 8)
    TB = max(8, min(tb, _round_up(pl.cdiv(B, 2), 8)))
    num_tiles = pl.cdiv(B, TB)   # ragged last block handled by Pallas masking

    def resident(shape):
        # Weights/biases use the same block every step -> VMEM-resident.
        return pl.BlockSpec(shape, lambda i: (0, 0))

    out = pl.pallas_call(
        _mlp_kernel,
        out_shape=jax.ShapeDtypeStruct((B, d_out), jnp.float32),
        grid=(num_tiles,),
        in_specs=[
            pl.BlockSpec((TB, d_in), lambda i: (i, 0)),   # d_in == full last dim
            resident(padded["w1"].shape), resident(padded["b1"].shape),
            resident(padded["w2"].shape), resident(padded["b2"].shape),
            resident(padded["w3"].shape), resident(padded["b3"].shape),
            resident(padded["w4"].shape), resident(padded["b4"].shape),
        ],
        out_specs=pl.BlockSpec((TB, d_out), lambda i: (i, 0)),  # d_out == full last dim
        compiler_params=pltpu.CompilerParams(
            dimension_semantics=("parallel",),
        ),
    )(x, padded["w1"], padded["b1"], padded["w2"], padded["b2"],
      padded["w3"], padded["b3"], padded["w4"], padded["b4"])

    return out


# ---------------------------------------------------------------------------
# Pure-JAX reference matching the kernel's bf16-in / f32-accumulate semantics.
# ---------------------------------------------------------------------------
def _reference_forward(x, params):
    bf = jnp.bfloat16

    def lin(h, w, b):
        return jnp.dot(h.astype(bf), w.astype(bf),
                       preferred_element_type=jnp.float32) + b

    h = jnp.maximum(lin(x, params["w1"], params["b1"]), 0.0)
    h = jnp.maximum(lin(h, params["w2"], params["b2"]), 0.0)
    h = jnp.tanh(lin(h, params["w3"], params["b3"]))
    return lin(h, params["w4"], params["b4"])


if __name__ == "__main__":
    input_size = 32

    key = jax.random.PRNGKey(0)
    key, kx1, kx2 = jax.random.split(key, 3)
    params = init_params(key, input_size)
    padded = prepare_padded_params(params, input_size)

    # Small deployment-style batch (single tile, grid=(1,)).
    x_small = jax.random.normal(kx1, (8, input_size), jnp.float32)
    out_small = jax.block_until_ready(neural_net_forward(x_small, padded))
    ref_small = _reference_forward(x_small, params)
    assert out_small.shape == (8, 2)
    assert jnp.allclose(out_small, ref_small, atol=2e-3, rtol=2e-3)

    # Larger batch: default tb -> TB=152, grid=(2,), ragged last block (304 > 300).
    x_big = jax.random.normal(kx2, (300, input_size), jnp.float32)
    out_big = jax.block_until_ready(neural_net_forward(x_big, padded))
    ref_big = _reference_forward(x_big, params)
    assert out_big.shape == (300, 2)
    assert jnp.allclose(out_big, ref_big, atol=2e-3, rtol=2e-3)

    # Non-multiple-of-8 tb gets rounded up (tb=100 -> 104), multi-step ragged grid.
    out_big2 = jax.block_until_ready(neural_net_forward(x_big, padded, tb=100))
    assert out_big2.shape == (300, 2)
    assert jnp.allclose(out_big2, ref_big, atol=2e-3, rtol=2e-3)

    print("KERNEL_OK")
</pallas_src>

<mosaic_0001>
module attributes {stable_mosaic.version = 11 : i64} {
  func.func @_mlp_kernel(%arg0: i32, %arg1: memref<8x32xf32, #tpu.memory_space<vmem>>, %arg2: memref<32x128xbf16, #tpu.memory_space<vmem>>, %arg3: memref<1x128xf32, #tpu.memory_space<vmem>>, %arg4: memref<128x128xbf16, #tpu.memory_space<vmem>>, %arg5: memref<1x128xf32, #tpu.memory_space<vmem>>, %arg6: memref<128x128xbf16, #tpu.memory_space<vmem>>, %arg7: memref<1x128xf32, #tpu.memory_space<vmem>>, %arg8: memref<128x128xbf16, #tpu.memory_space<vmem>>, %arg9: memref<1x128xf32, #tpu.memory_space<vmem>>, %arg10: memref<8x2xf32, #tpu.memory_space<vmem>>) attributes {dimension_semantics = [#tpu.dimension_semantics<parallel>], iteration_bounds = array<i64: 1>, scalar_prefetch = 0 : i64, scratch_operands = 0 : i64, tpu.core_type = #tpu.core_type<tc>, window_params = [{transform_indices = @transform_0, window_bounds = array<i64: 8, 32>}, {pipeline_mode = #tpu.pipeline_mode<synchronous>, transform_indices = @transform_1, window_bounds = array<i64: 32, 128>}, {pipeline_mode = #tpu.pipeline_mode<synchronous>, transform_indices = @transform_2, window_bounds = array<i64: 1, 128>}, {pipeline_mode = #tpu.pipeline_mode<synchronous>, transform_indices = @transform_3, window_bounds = array<i64: 128, 128>}, {pipeline_mode = #tpu.pipeline_mode<synchronous>, transform_indices = @transform_4, window_bounds = array<i64: 1, 128>}, {pipeline_mode = #tpu.pipeline_mode<synchronous>, transform_indices = @transform_5, window_bounds = array<i64: 128, 128>}, {pipeline_mode = #tpu.pipeline_mode<synchronous>, transform_indices = @transform_6, window_bounds = array<i64: 1, 128>}, {pipeline_mode = #tpu.pipeline_mode<synchronous>, transform_indices = @transform_7, window_bounds = array<i64: 128, 128>}, {pipeline_mode = #tpu.pipeline_mode<synchronous>, transform_indices = @transform_8, window_bounds = array<i64: 1, 128>}, {transform_indices = @transform_9, window_bounds = array<i64: 8, 2>}]} {
    %c0 = arith.constant 0 : index
    %c0_0 = arith.constant 0 : index
    %0 = vector.load %arg1[%c0, %c0_0] : memref<8x32xf32, #tpu.memory_space<vmem>>, vector<8x32xf32>
    %1 = arith.truncf %0 : vector<8x32xf32> to vector<8x32xbf16>
    %c0_1 = arith.constant 0 : index
    %c0_2 = arith.constant 0 : index
    %2 = vector.load %arg2[%c0_1, %c0_2] : memref<32x128xbf16, #tpu.memory_space<vmem>>, vector<32x128xbf16>
    %cst = arith.constant dense<0.000000e+00> : vector<8x128xf32>
    %3 = tpu.matmul %1, %2, %cst {dimension_numbers = #tpu.dot_dimension_numbers<[1], [0], [0], [1], [0, 0, 1, 1], [], []>} : vector<8x32xbf16>, vector<32x128xbf16>, vector<8x128xf32> -> vector<8x128xf32>
    %c0_3 = arith.constant 0 : index
    %c0_4 = arith.constant 0 : index
    %4 = vector.load %arg3[%c0_3, %c0_4] : memref<1x128xf32, #tpu.memory_space<vmem>>, vector<1x128xf32>
    %5 = vector.broadcast %4 : vector<1x128xf32> to vector<8x128xf32>
    %6 = arith.addf %3, %5 : vector<8x128xf32>
    %cst_5 = arith.constant 0.000000e+00 : f32
    %7 = vector.broadcast %cst_5 : f32 to vector<8x128xf32>
    %8 = arith.maximumf %6, %7 : vector<8x128xf32>
    %9 = arith.truncf %8 : vector<8x128xf32> to vector<8x128xbf16>
    %c0_6 = arith.constant 0 : index
    %c0_7 = arith.constant 0 : index
    %10 = vector.load %arg4[%c0_6, %c0_7] : memref<128x128xbf16, #tpu.memory_space<vmem>>, vector<128x128xbf16>
    %cst_8 = arith.constant dense<0.000000e+00> : vector<8x128xf32>
    %11 = tpu.matmul %9, %10, %cst_8 {dimension_numbers = #tpu.dot_dimension_numbers<[1], [0], [0], [1], [0, 0, 1, 1], [], []>} : vector<8x128xbf16>, vector<128x128xbf16>, vector<8x128xf32> -> vector<8x128xf32>
    %c0_9 = arith.constant 0 : index
    %c0_10 = arith.constant 0 : index
    %12 = vector.load %arg5[%c0_9, %c0_10] : memref<1x128xf32, #tpu.memory_space<vmem>>, vector<1x128xf32>
    %13 = vector.broadcast %12 : vector<1x128xf32> to vector<8x128xf32>
    %14 = arith.addf %11, %13 : vector<8x128xf32>
    %cst_11 = arith.constant 0.000000e+00 : f32
    %15 = vector.broadcast %cst_11 : f32 to vector<8x128xf32>
    %16 = arith.maximumf %14, %15 : vector<8x128xf32>
    %17 = arith.truncf %16 : vector<8x128xf32> to vector<8x128xbf16>
    %c0_12 = arith.constant 0 : index
    %c0_13 = arith.constant 0 : index
    %18 = vector.load %arg6[%c0_12, %c0_13] : memref<128x128xbf16, #tpu.memory_space<vmem>>, vector<128x128xbf16>
    %cst_14 = arith.constant dense<0.000000e+00> : vector<8x128xf32>
    %19 = tpu.matmul %17, %18, %cst_14 {dimension_numbers = #tpu.dot_dimension_numbers<[1], [0], [0], [1], [0, 0, 1, 1], [], []>} : vector<8x128xbf16>, vector<128x128xbf16>, vector<8x128xf32> -> vector<8x128xf32>
    %c0_15 = arith.constant 0 : index
    %c0_16 = arith.constant 0 : index
    %20 = vector.load %arg7[%c0_15, %c0_16] : memref<1x128xf32, #tpu.memory_space<vmem>>, vector<1x128xf32>
    %21 = vector.broadcast %20 : vector<1x128xf32> to vector<8x128xf32>
    %22 = arith.addf %19, %21 : vector<8x128xf32>
    %23 = math.tanh %22 : vector<8x128xf32>
    %24 = arith.truncf %23 : vector<8x128xf32> to vector<8x128xbf16>
    %c0_17 = arith.constant 0 : index
    %c0_18 = arith.constant 0 : index
    %25 = vector.load %arg8[%c0_17, %c0_18] : memref<128x128xbf16, #tpu.memory_space<vmem>>, vector<128x128xbf16>
    %cst_19 = arith.constant dense<0.000000e+00> : vector<8x128xf32>
    %26 = tpu.matmul %24, %25, %cst_19 {dimension_numbers = #tpu.dot_dimension_numbers<[1], [0], [0], [1], [0, 0, 1, 1], [], []>} : vector<8x128xbf16>, vector<128x128xbf16>, vector<8x128xf32> -> vector<8x128xf32>
    %c0_20 = arith.constant 0 : index
    %c0_21 = arith.constant 0 : index
    %27 = vector.load %arg9[%c0_20, %c0_21] : memref<1x128xf32, #tpu.memory_space<vmem>>, vector<1x128xf32>
    %28 = vector.broadcast %27 : vector<1x128xf32> to vector<8x128xf32>
    %29 = arith.addf %26, %28 : vector<8x128xf32>
    %30 = vector.extract_strided_slice %29 {offsets = [0, 0], sizes = [8, 2], strides = [1, 1]} : vector<8x128xf32> to vector<8x2xf32>
    %c0_22 = arith.constant 0 : index
    %c0_23 = arith.constant 0 : index
    %31 = vector.load %arg10[%c0_22, %c0_23] : memref<8x2xf32, #tpu.memory_space<vmem>>, vector<8x2xf32>
    tpu.vector_store %arg10[%c0_22, %c0_23], %30 {strides = array<i32>} : memref<8x2xf32, #tpu.memory_space<vmem>>, vector<8x2xf32>,
    return
  }
  func.func @transform_0(%arg0: i32) -> (i32, i32) {
    %c0_i32 = arith.constant 0 : i32
    %c0_i32_0 = arith.constant 0 : i32
    return %arg0, %c0_i32 : i32, i32
  }
  func.func @transform_1(%arg0: i32) -> (i32, i32) {
    %c0_i32 = arith.constant 0 : i32
    %c0_i32_0 = arith.constant 0 : i32
    %c0_i32_1 = arith.constant 0 : i32
    return %c0_i32, %c0_i32_0 : i32, i32
  }
  func.func @transform_2(%arg0: i32) -> (i32, i32) {
    %c0_i32 = arith.constant 0 : i32
    %c0_i32_0 = arith.constant 0 : i32
    %c0_i32_1 = arith.constant 0 : i32
    return %c0_i32, %c0_i32_0 : i32, i32
  }
  func.func @transform_3(%arg0: i32) -> (i32, i32) {
    %c0_i32 = arith.constant 0 : i32
    %c0_i32_0 = arith.constant 0 : i32
    %c0_i32_1 = arith.constant 0 : i32
    return %c0_i32, %c0_i32_0 : i32, i32
  }
  func.func @transform_4(%arg0: i32) -> (i32, i32) {
    %c0_i32 = arith.constant 0 : i32
    %c0_i32_0 = arith.constant 0 : i32
    %c0_i32_1 = arith.constant 0 : i32
    return %c0_i32, %c0_i32_0 : i32, i32
  }
  func.func @transform_5(%arg0: i32) -> (i32, i32) {
    %c0_i32 = arith.constant 0 : i32
    %c0_i32_0 = arith.constant 0 : i32
    %c0_i32_1 = arith.constant 0 : i32
    return %c0_i32, %c0_i32_0 : i32, i32
  }
  func.func @transform_6(%arg0: i32) -> (i32, i32) {
    %c0_i32 = arith.constant 0 : i32
    %c0_i32_0 = arith.constant 0 : i32
    %c0_i32_1 = arith.constant 0 : i32
    return %c0_i32, %c0_i32_0 : i32, i32
  }
  func.func @transform_7(%arg0: i32) -> (i32, i32) {
    %c0_i32 = arith.constant 0 : i32
    %c0_i32_0 = arith.constant 0 : i32
    %c0_i32_1 = arith.constant 0 : i32
    return %c0_i32, %c0_i32_0 : i32, i32
  }
  func.func @transform_8(%arg0: i32) -> (i32, i32) {
    %c0_i32 = arith.constant 0 : i32
    %c0_i32_0 = arith.constant 0 : i32
    %c0_i32_1 = arith.constant 0 : i32
    return %c0_i32, %c0_i32_0 : i32, i32
  }
  func.func @transform_9(%arg0: i32) -> (i32, i32) {
    %c0_i32 = arith.constant 0 : i32
    %c0_i32_0 = arith.constant 0 : i32
    return %arg0, %c0_i32 : i32, i32
  }
}

</mosaic_0001>

<bundles_post_ra>
// kernel: neural_net_forward.1
= control target key start
LH: loop header
LB: loop body
LE: loop exit
PB: predicated region body
PF: predicated region fallthrough
CT: control target
= control target key end

     0   :  { %14 = vsyncpa [#allocation3], 0  ;;  %s1024_s0 = inlined_call_operand.hbm [shape: f32[8,32], index: 0, kind: input, shape index: {}]   ;;  %s1025_s1 = inlined_call_operand.vmem [shape: bf16[32,128], index: 1, kind: input, shape index: {}]   ;;  %s1026_s2 = inlined_call_operand.vmem [shape: f32[1,128], index: 2, kind: input, shape index: {}]   ;;  %s1027_s3 = inlined_call_operand.hbm [shape: bf16[128,128], index: 3, kind: input, shape index: {}]   ;;  %s1028_s4 = inlined_call_operand.vmem [shape: f32[1,128], index: 4, kind: input, shape index: {}]   ;;  %s1029_s5 = inlined_call_operand.hbm [shape: bf16[128,128], index: 5, kind: input, shape index: {}]   ;;  %s1030_s6 = inlined_call_operand.hbm [shape: f32[1,128], index: 6, kind: input, shape index: {}]   ;;  %s1031_s7 = inlined_call_operand.hbm [shape: bf16[128,128], index: 7, kind: input, shape index: {}]   ;;  %s1032_s8 = inlined_call_operand.hbm [shape: f32[1,128], index: 8, kind: input, shape index: {}]   ;;  %s1033_s9 = inlined_call_operand.vmem [shape: f32[8,2], index: 9, kind: output, shape index: {}]  }
   0x1   :  { %15 = vsyncpa [#allocation5], 0 }
   0x2   :  { %16 = vsyncpa [#allocation8], 0 }
   0x3   :  { %17 = vsyncpa [#allocation11], 0  ;;  %s834_s30 = smov [#allocation4]   ;;  %s694_s13 = scalar_lea.hbm %s1027_s3, 1024 }
   0x4   :  { %s37_s10 = sshll.u32 %s834_s30, 4  ;;  %p695_p0 = scmp.ne.s32.totalorder %s1027_s3, %s694_s13  ;;  %s38_s10 = int_to_ptr.vmem [resolvable:$true] %s37_s10 }
   0x5   :  { %p698_p1 = scmp.lt.u32.totalorder %s694_s13, %s1027_s3 }
   0x7   :  { %p700_p2 = pnand %p698_p1, %p695_p0 }
   0x9   :  { %703 = shalt.err (!%p700_p2)
}
   0xa   :  { %s704_s18 = scalar_lea.vmem %s38_s10, 1024  ;;  %p709_p4 = scmp.lt.s32.totalorder %s38_s10, %s38_s10 }
   0xb   :  { %p705_p3 = scmp.ne.s32.totalorder %s38_s10, %s704_s18  ;;  %p710_p5 = scmp.lt.s32.totalorder %s704_s18, %s704_s18 }
   0xd   :  { %p711_p6 = por %p710_p5, %p709_p4 }
   0xf   :  { %p712_p7 = pnand %p711_p6, %p705_p3 }
  0x11   :  { %715 = shalt.err (!%p712_p7)
}
  0x12   :  { %s835_s19 = smov 64   ;;  %s836_s20 = smov 4  }
  0x13   :  { %43 = dma.hbm_to_vmem [thread:$0]  %s1027_s3, 1024, %s38_s10, [#allocation5], %s835_s19, %s835_s19, %s836_s20  }
  0x14   :  { %s837_s23 = smov [#allocation7]   ;;  %s838_s25 = smov [#allocation2]  }
  0x15   :  { %s64_s24 = sshll.u32 %s837_s23, 4  ;;  %s24_s26 = sshll.u32 %s838_s25, 4  ;;  %s65_s24 = int_to_ptr.vmem [resolvable:$true] %s64_s24  ;;  %s25_s26 = int_to_ptr.vmem [resolvable:$true] %s24_s26 }
  0x16   :  { %s716_s29 = scalar_lea.hbm %s1030_s6, 16 }
  0x17   :  { %p717_p8 = scmp.ne.s32.totalorder %s1030_s6, %s716_s29  ;;  %p720_p9 = scmp.lt.u32.totalorder %s716_s29, %s1030_s6 }
  0x19   :  { %p722_p10 = pnand %p720_p9, %p717_p8 }
  0x1b   :  { %725 = shalt.err (!%p722_p10)
}
  0x1c   :  { %s726_s3 = scalar_lea.vmem %s65_s24, 16  ;;  %s730_s10 = scalar_lea.vmem %s65_s24, 32 }
  0x1d   :  { %p727_p11 = scmp.ne.s32.totalorder %s65_s24, %s726_s3  ;;  %p731_p12 = scmp.lt.s32.totalorder %s65_s24, %s65_s24 }
  0x1e   :  { %p732_p13 = scmp.lt.s32.totalorder %s730_s10, %s726_s3 }
  0x20   :  { %p733_p0 = por %p732_p13, %p731_p12 }
  0x22   :  { %p734_p1 = pnand %p733_p0, %p727_p11 }
  0x24   :  { %737 = shalt.err (!%p734_p1)
}
  0x25   :  { %67 = dma.hbm_to_vmem [thread:$0]  %s1030_s6, 16, %s65_s24, [#allocation8]  }
  0x26   :  { %s738_s18 = scalar_lea.hbm %s1024_s0, 128 }
  0x27   :  { %p739_p2 = scmp.ne.s32.totalorder %s1024_s0, %s738_s18  ;;  %p742_p3 = scmp.lt.u32.totalorder %s738_s18, %s1024_s0 }
  0x29   :  { %p744_p4 = pnand %p742_p3, %p739_p2 }
  0x2b   :  { %747 = shalt.err (!%p744_p4)
}
  0x2c   :  { %s748_s27 = scalar_lea.vmem %s25_s26, 128  ;;  %p753_p6 = scmp.lt.s32.totalorder %s25_s26, %s25_s26 }
  0x2d   :  { %p749_p5 = scmp.ne.s32.totalorder %s25_s26, %s748_s27  ;;  %p754_p7 = scmp.lt.s32.totalorder %s748_s27, %s748_s27 }
  0x2f   :  { %p755_p8 = por %p754_p7, %p753_p6 }
  0x31   :  { %p756_p9 = pnand %p755_p8, %p749_p5 }
  0x33   :  { %759 = shalt.err (!%p756_p9)
}
  0x34   :  { %27 = dma.hbm_to_vmem [thread:$0]  %s1024_s0, 128, %s25_s26, [#allocation3]  }
  0x35   :  { %s839_s28 = smov [#allocation6]   ;;  %s840_s30 = smov [#allocation9]  }
  0x36   :  { %s51_s29 = sshll.u32 %s839_s28, 4  ;;  %s73_s11 = sshll.u32 %s840_s30, 4  ;;  %s52_s29 = int_to_ptr.vmem [resolvable:$true] %s51_s29  ;;  %s74_s11 = int_to_ptr.vmem [resolvable:$true] %s73_s11 }
  0x37   :  { %s760_s3 = scalar_lea.hbm %s1029_s5, 1024 }
  0x38   :  { %p761_p10 = scmp.ne.s32.totalorder %s1029_s5, %s760_s3  ;;  %p764_p11 = scmp.lt.u32.totalorder %s760_s3, %s1029_s5 }
  0x3a   :  { %p766_p12 = pnand %p764_p11, %p761_p10 }
  0x3c   :  { %769 = shalt.err (!%p766_p12)
}
  0x3d   :  { %s770_s0 = scalar_lea.vmem %s52_s29, 1024  ;;  %p775_p0 = scmp.lt.s32.totalorder %s52_s29, %s52_s29 }
  0x3e   :  { %p771_p13 = scmp.ne.s32.totalorder %s52_s29, %s770_s0  ;;  %p776_p1 = scmp.lt.s32.totalorder %s770_s0, %s770_s0 }
  0x40   :  { %p777_p2 = por %p776_p1, %p775_p0 }
  0x42   :  { %p778_p3 = pnand %p777_p2, %p771_p13 }
  0x44   :  { %781 = shalt.err (!%p778_p3)
}
  0x45   :  { %57 = dma.hbm_to_vmem [thread:$0]  %s1029_s5, 1024, %s52_s29, [#allocation5], %s835_s19, %s835_s19, %s836_s20  }
  0x46   :  { %s782_s22 = scalar_lea.hbm %s1031_s7, 1024 }
  0x47   :  { %p783_p4 = scmp.ne.s32.totalorder %s1031_s7, %s782_s22  ;;  %p786_p5 = scmp.lt.u32.totalorder %s782_s22, %s1031_s7 }
  0x49   :  { %p788_p6 = pnand %p786_p5, %p783_p4 }
  0x4b   :  { %791 = shalt.err (!%p788_p6)
}
  0x4c   :  { %s792_s24 = scalar_lea.vmem %s74_s11, 1024  ;;  %p797_p8 = scmp.lt.s32.totalorder %s74_s11, %s74_s11 }
  0x4d   :  { %p793_p7 = scmp.ne.s32.totalorder %s74_s11, %s792_s24  ;;  %p798_p9 = scmp.lt.s32.totalorder %s792_s24, %s792_s24 }
  0x4f   :  { %p799_p10 = por %p798_p9, %p797_p8 }
  0x51   :  { %p800_p11 = pnand %p799_p10, %p793_p7 }
  0x53   :  { %803 = shalt.err (!%p800_p11)
}
  0x54   :  { %79 = dma.hbm_to_vmem [thread:$0]  %s1031_s7, 1024, %s74_s11, [#allocation8], %s835_s19, %s835_s19, %s836_s20  }
  0x55   :  { %s841_s29 = smov [#allocation10]   ;;  %s804_s3 = scalar_lea.hbm %s1032_s8, 16 }
  0x56   :  { %s86_s30 = sshll.u32 %s841_s29, 4  ;;  %p805_p12 = scmp.ne.s32.totalorder %s1032_s8, %s804_s3  ;;  %s87_s30 = int_to_ptr.vmem [resolvable:$true] %s86_s30 }
  0x57   :  { %p808_p13 = scmp.lt.u32.totalorder %s804_s3, %s1032_s8 }
  0x59   :  { %p810_p0 = pnand %p808_p13, %p805_p12 }
  0x5b   :  { %813 = shalt.err (!%p810_p0)
}
  0x5c   :  { %s814_s0 = scalar_lea.vmem %s87_s30, 16  ;;  %s818_s7 = scalar_lea.vmem %s87_s30, 32 }
  0x5d   :  { %p815_p1 = scmp.ne.s32.totalorder %s87_s30, %s814_s0  ;;  %p819_p2 = scmp.lt.s32.totalorder %s87_s30, %s87_s30 }
  0x5e   :  { %p820_p3 = scmp.lt.s32.totalorder %s818_s7, %s814_s0 }
  0x60   :  { %p821_p4 = por %p820_p3, %p819_p2 }
  0x62   :  { %p822_p5 = pnand %p821_p4, %p815_p1 }
  0x64   :  { %825 = shalt.err (!%p822_p5)
}
  0x65   :  { %89 = dma.hbm_to_vmem [thread:$0]  %s1032_s8, 16, %s87_s30, [#allocation11]  }
  0x66   :  { %826 = dma.done.wait [#allocation3], 128  }
  0x67   :  { %827 = vsyncadd [#allocation3], 4294967168 }
  0x68   :  { %828 = dma.done.wait [#allocation5], 2048  }
  0x69   :  { %829 = vsyncadd [#allocation5], 4294965248 }
  0x6a   :  { %830 = dma.done.wait [#allocation8], 1040  }
  0x6b   :  { %831 = vsyncadd [#allocation8], 4294966256 }
  0x6c   :  { %832 = dma.done.wait [#allocation11], 16  }
  0x6d   :  { %833 = vsyncadd [#allocation11], 4294967280  ;;  %v842_v0 = vmov 0.0   ;;  %vm843_vm0 = vmmov 0   ;;  %v666_v1 = vld [vmem:[%s1025_s1] sm:$0xff]   ;;  %v667_v2 = vld [vmem:[%s1025_s1 + $0x8] sm:$0xff]  }
  0x6e   :  { %588 = vmatprep.subr.bf16.mxu0 %v842_v0  ;;  %592 = vmatprep.mubr.msk.bf16.mxu0 %vm843_vm0, %v842_v0  ;;  %v109_v3 = vld [vmem:[#allocation2] sm:$0xff]  ;;  %v668_v4 = vld [vmem:[#allocation4] sm:$0xff]   ;;  %v669_v6 = vld [vmem:[#allocation4 + $0x8] sm:$0xff]   ;;  %vm134_vm1 = vcmask 261120   ;;  %vm517_vm2 = vcmask 15360  }
  0x6f   :  { %596 = vmatprep.subr.bf16.mxu1 %v842_v0  ;;  %612 = vmatprep.mubr.msk.bf16.mxu1 %vm843_vm0, %v842_v0  ;;  %v110_v5 = vpack.c.bf16 %v109_v3, %v109_v3  ;;  %v670_v7 = vld [vmem:[#allocation4 + $0x10] sm:$0xff]   ;;  %v671_v8 = vld [vmem:[#allocation4 + $0x18] sm:$0xff]   ;;  %v672_v9 = vld [vmem:[#allocation4 + $0x20] sm:$0xff]  }
  0x70   :  { %589 = vmatpush3.bf16.msra.mxu0 %v666_v1  ;;  %597 = vmatpush3.bf16.msra.mxu1 %v668_v4  ;;  %v673_v10 = vld [vmem:[#allocation4 + $0x28] sm:$0xff]   ;;  %v674_v11 = vld [vmem:[#allocation4 + $0x30] sm:$0xff]   ;;  %v675_v12 = vld [vmem:[#allocation4 + $0x38] sm:$0xff]  }
  0x71   :  { %590 = vmatprep.subr.bf16.mxu0 %v842_v0  ;;  %598 = vmatprep.subr.bf16.mxu1 %v842_v0  ;;  %v676_v13 = vld [vmem:[#allocation6] sm:$0xff]   ;;  %v677_v14 = vld [vmem:[#allocation6 + $0x8] sm:$0xff]   ;;  %v678_v15 = vld [vmem:[#allocation6 + $0x10] sm:$0xff]  }
  0x72   :  { %v679_v16 = vld [vmem:[#allocation6 + $0x18] sm:$0xff]   ;;  %v680_v17 = vld [vmem:[#allocation6 + $0x20] sm:$0xff]   ;;  %v681_v18 = vld [vmem:[#allocation6 + $0x28] sm:$0xff]  }
  0x73   :  { %v527_v19 = vld [vmem:[%s1026_s2] ss:$0 sm:$0xff]  ;;  %v682_v27 = vld [vmem:[#allocation6 + $0x30] sm:$0xff]   ;;  %v683_v28 = vld [vmem:[#allocation6 + $0x38] sm:$0xff]  }
  0x74   :  { %591 = vmatpush3.bf16.msra.mxu0 %v667_v2  ;;  %599 = vmatpush3.bf16.msra.mxu1 %v669_v6  ;;  %v684_v29 = vld [vmem:[#allocation9] sm:$0xff]   ;;  %v685_v30 = vld [vmem:[#allocation9 + $0x8] sm:$0xff]   ;;  %v686_v31 = vld [vmem:[#allocation9 + $0x10] sm:$0xff]  }
  0x75   :  { %616 = vmatprep.subr.bf16.mxu0 %v842_v0  ;;  %600 = vmatprep.subr.bf16.mxu1 %v842_v0  ;;  %v687_v32 = vld [vmem:[#allocation9 + $0x18] sm:$0xff]   ;;  %v688_v41 = vld [vmem:[#allocation9 + $0x20] sm:$0xff]   ;;  %v689_v42 = vld [vmem:[#allocation9 + $0x28] sm:$0xff]  }
  0x76   :  { %v531_v33 = vld [vmem:[%s1028_s4] ss:$0 sm:$0xff]  ;;  %v690_v43 = vld [vmem:[#allocation9 + $0x30] sm:$0xff]   ;;  %v549_v53 = vld [vmem:[#allocation10] ss:$0 sm:$0xff] }
  0x77   :  { %593 = vmatmul.mubr.msk.bf16.vlgmr.msra.gmra.mrb[0].mxu0 %vm134_vm1, %v110_v5  ;;  %v691_v44 = vld [vmem:[#allocation9 + $0x38] sm:$0xff]  }
  0x78   :  { %632 = vmatprep.mubr.msk.bf16.mxu0 %vm843_vm0, %v842_v0  ;;  %601 = vmatpush3.bf16.msra.mxu1 %v670_v7  ;;  %v540_v45 = vld [vmem:[#allocation7] ss:$0 sm:$0xff] }
  0x79   :  { %602 = vmatprep.subr.bf16.mxu1 %v842_v0  ;;  %617 = vmatpush3.bf16.msra.mxu0 %v676_v13 }
  0x7a   :  { %618 = vmatprep.subr.bf16.mxu0 %v842_v0 }
  0x7c   :  { %603 = vmatpush3.bf16.msra.mxu1 %v671_v8 }
  0x7d   :  { %604 = vmatprep.subr.bf16.mxu1 %v842_v0  ;;  %619 = vmatpush3.bf16.msra.mxu0 %v677_v14 }
  0x7e   :  { %620 = vmatprep.subr.bf16.mxu0 %v842_v0 }
  0x80   :  { %605 = vmatpush3.bf16.msra.mxu1 %v672_v9 }
  0x81   :  { %606 = vmatprep.subr.bf16.mxu1 %v842_v0  ;;  %621 = vmatpush3.bf16.msra.mxu0 %v678_v15 }
  0x82   :  { %622 = vmatprep.subr.bf16.mxu0 %v842_v0 }
  0x84   :  { %607 = vmatpush3.bf16.msra.mxu1 %v673_v10 }
  0x85   :  { %608 = vmatprep.subr.bf16.mxu1 %v842_v0  ;;  %623 = vmatpush3.bf16.msra.mxu0 %v679_v16 }
  0x86   :  { %624 = vmatprep.subr.bf16.mxu0 %v842_v0 }
  0x88   :  { %609 = vmatpush3.bf16.msra.mxu1 %v674_v11 }
  0x89   :  { %610 = vmatprep.subr.bf16.mxu1 %v842_v0  ;;  %625 = vmatpush3.bf16.msra.mxu0 %v680_v17 }
  0x8a   :  { %626 = vmatprep.subr.bf16.mxu0 %v842_v0 }
  0x8c   :  { %611 = vmatpush3.bf16.msra.mxu1 %v675_v12 }
  0x8d   :  { %636 = vmatprep.subr.bf16.mxu1 %v842_v0  ;;  %627 = vmatpush3.bf16.msra.mxu0 %v681_v18 }
  0x8e   :  { %628 = vmatprep.subr.bf16.mxu0 %v842_v0 }
  0x91   :  { %629 = vmatpush3.bf16.msra.mxu0 %v682_v27 }
  0x92   :  { %630 = vmatprep.subr.bf16.mxu0 %v842_v0 }
  0x95   :  { %631 = vmatpush3.bf16.msra.mxu0 %v683_v28 }
 0x14a   :  { %v172_v20 = vpop.f32.mrb[0].mxu0 }
 0x14b   :  { %v173_v21 = vadd.f32 %v527_v19, %v172_v20  ;;  %v594_v22 = vpop.f32.mrb[1].mxu0 }
 0x14c   :  { %v175_v23 = vpop.f32.mrb[2].mxu0 }
 0x14d   :  { %v178_v24 = vmax.f32 %v173_v21, 0.0  ;;  %v595_v25 = vpop.f32.mrb[3].mxu0 }
 0x14f   :  { %v179_v26 = vpack.c.bf16 %v178_v24, %v178_v24 }
 0x151   :  { %613 = vmatmul.mubr.bf16.vlgmr.msra.gmra.mrb[0].mxu1 %v179_v26 }
 0x152   :  { %652 = vmatprep.mubr.msk.bf16.mxu1 %vm843_vm0, %v842_v0  ;;  %637 = vmatpush3.bf16.msra.mxu1 %v684_v29 }
 0x153   :  { %638 = vmatprep.subr.bf16.mxu1 %v842_v0 }
 0x156   :  { %639 = vmatpush3.bf16.msra.mxu1 %v685_v30 }
 0x157   :  { %640 = vmatprep.subr.bf16.mxu1 %v842_v0 }
 0x15a   :  { %641 = vmatpush3.bf16.msra.mxu1 %v686_v31 }
 0x15b   :  { %642 = vmatprep.subr.bf16.mxu1 %v842_v0 }
 0x15e   :  { %643 = vmatpush3.bf16.msra.mxu1 %v687_v32 }
 0x15f   :  { %644 = vmatprep.subr.bf16.mxu1 %v842_v0 }
 0x162   :  { %645 = vmatpush3.bf16.msra.mxu1 %v688_v41 }
 0x163   :  { %646 = vmatprep.subr.bf16.mxu1 %v842_v0 }
 0x166   :  { %647 = vmatpush3.bf16.msra.mxu1 %v689_v42 }
 0x167   :  { %648 = vmatprep.subr.bf16.mxu1 %v842_v0 }
 0x16a   :  { %649 = vmatpush3.bf16.msra.mxu1 %v690_v43 }
 0x16b   :  { %650 = vmatprep.subr.bf16.mxu1 %v842_v0 }
 0x16e   :  { %651 = vmatpush3.bf16.msra.mxu1 %v691_v44 }
 0x224   :  { %v285_v34 = vpop.f32.mrb[0].mxu1 }
 0x225   :  { %v286_v35 = vadd.f32 %v531_v33, %v285_v34  ;;  %v614_v36 = vpop.f32.mrb[1].mxu1 }
 0x226   :  { %v288_v37 = vpop.f32.mrb[2].mxu1 }
 0x227   :  { %v291_v38 = vmax.f32 %v286_v35, 0.0  ;;  %v615_v39 = vpop.f32.mrb[3].mxu1 }
 0x229   :  { %v292_v40 = vpack.c.bf16 %v291_v38, %v291_v38 }
 0x22b   :  { %633 = vmatmul.mubr.bf16.vlgmr.msra.gmra.mrb[4].mxu0 %v292_v40 }
 0x2fe   :  { %v398_v46 = vpop.f32.mrb[4].mxu0 }
 0x2ff   :  { %v399_v47 = vadd.f32 %v540_v45, %v398_v46  ;;  %v634_v48 = vpop.f32.mrb[5].mxu0 }
 0x300   :  { %v401_v49 = vpop.f32.mrb[6].mxu0 }
 0x301   :  { %692 = vtanh.f32 %v399_v47  ;;  %v635_v50 = vpop.f32.mrb[7].mxu0 }
 0x30b   :  { %v693_v51 = vpop.eup %692 }
 0x30c   :  { %v405_v52 = vpack.c.bf16 %v693_v51, %v693_v51 }
 0x30e   :  { %653 = vmatmul.mubr.bf16.vlgmr.msra.gmra.mrb[4].mxu1 %v405_v52 }
 0x3e1   :  { %v511_v54 = vpop.f32.mrb[4].mxu1 }
 0x3e2   :  { %v512_v55 = vadd.f32 %v549_v53, %v511_v54  ;;  %v654_v56 = vpop.f32.mrb[5].mxu1 }
 0x3e3   :  { %v514_v57 = vpop.f32.mrb[6].mxu1 }
 0x3e4   :  { %518 = vst.msk [vmem:[%s1033_s9] sm:$0xff] %vm517_vm2, %v512_v55  ;;  %v655_v58 = vpop.f32.mrb[7].mxu1 }
 0x3e5   :  { %523 = vsyncpa [#allocation3], 1 }
 0x3e6   :  { %524 = vsyncpa [#allocation5], 1 }
 0x3e7   :  { %525 = vsyncpa [#allocation8], 1 }
 0x3e8   :  { %526 = vsyncpa [#allocation11], 1 }

</bundles_post_ra>
